<compile_context>
chip_gen: v7x
topology: tpu7x:2x2x1
jax: 0.10.0
libtpu: 0.0.40
codegen_flags: <defaults>
</compile_context>

<pallas_src>
import functools

import jax
import jax.numpy as jnp
from jax.experimental import pallas as pl
from jax.experimental.pallas import tpu as pltpu


def mlp_kernel(x_ref, w1_ref, b1_ref, w2_ref, b2_ref, o_ref):
    """One batch tile of sigmoid(relu(x @ W1^T + b1) @ W2^T + b2), feature-major.

    x_ref : (TILE_B, 16)  VMEM
    w1_ref: (64, 16)      VMEM (resident)   -- PyTorch fc1.weight layout
    b1_ref: (64, 1)       VMEM (resident)
    w2_ref: (1, 64)       VMEM (resident)   -- PyTorch fc2.weight layout
    b2_ref: (1,)          SMEM scalar
    o_ref : (1, TILE_B)   VMEM, lane-dense along batch
    """
    xt = x_ref[...].T                                     # (16, TILE_B), XLU transpose
    h = jnp.dot(w1_ref[...], xt,
                preferred_element_type=jnp.float32)       # (64, TILE_B) on MXU
    h = jnp.maximum(h + b1_ref[...], 0.0)                 # bias lane-broadcast + ReLU
    y = jnp.dot(w2_ref[...], h,
                preferred_element_type=jnp.float32)       # (1, TILE_B) on MXU
    y = jax.nn.sigmoid(y + b2_ref[0])                     # scalar bias from SMEM
    o_ref[...] = y.astype(o_ref.dtype)


@functools.partial(jax.jit, static_argnames=("tile_b",))
def neural_net_forward(x, w1, b1, w2, b2, *, tile_b=1024):
    """x: (B, 16) f32. Weights in PyTorch layout:
       w1 (64, 16), b1 (64,), w2 (1, 64), b2 (1,).  Returns (B, 1) f32."""
    B, F = x.shape
    assert F == 16 and w1.shape == (64, 16) and w2.shape == (1, 64)

    if B <= tile_b:
        # Single tile: block == full array, no alignment/padding needed.
        tile_b = B
        b_pad = B
    else:
        # Multi-tile: lane-dense output strip requires a 128-multiple tile.
        assert tile_b % 128 == 0
        b_pad = ((B + tile_b - 1) // tile_b) * tile_b
        if b_pad != B:
            x = jnp.pad(x, ((0, b_pad - B), (0, 0)))      # ragged-tail handling
    num_tiles = b_pad // tile_b

    b1_col = b1.reshape(64, 1).astype(jnp.float32)
    b2_s = b2.reshape(1).astype(jnp.float32)

    out = pl.pallas_call(
        mlp_kernel,
        out_shape=jax.ShapeDtypeStruct((1, b_pad), jnp.float32),
        grid=(num_tiles,),
        in_specs=[
            pl.BlockSpec((tile_b, 16), lambda i: (i, 0)),            # x tile (pipelined)
            pl.BlockSpec((64, 16), lambda i: (0, 0)),                # W1, VMEM-resident
            pl.BlockSpec((64, 1), lambda i: (0, 0)),                 # b1, VMEM-resident
            pl.BlockSpec((1, 64), lambda i: (0, 0)),                 # W2, VMEM-resident
            pl.BlockSpec(memory_space=pltpu.MemorySpace.SMEM),       # b2 scalar in SMEM
        ],
        out_specs=pl.BlockSpec((1, tile_b), lambda i: (0, i)),       # lane-dense output
        compiler_params=pltpu.CompilerParams(
            dimension_semantics=("parallel",),                       # v7x: 2 TCs
        ),
    )(x, w1, b1_col, w2, b2_s)

    return out.reshape(-1)[:B].reshape(B, 1)


def init_params(key):
    """Deterministic init with PyTorch nn.Linear parameter shapes (out, in)."""
    k1, k2, k3, k4 = jax.random.split(key, 4)
    bound1 = 1.0 / jnp.sqrt(16.0)
    w1 = jax.random.uniform(k1, (64, 16), jnp.float32, -bound1, bound1)  # fc1.weight
    b1 = jax.random.uniform(k2, (64,), jnp.float32, -bound1, bound1)     # fc1.bias
    bound2 = 1.0 / jnp.sqrt(64.0)
    w2 = jax.random.uniform(k3, (1, 64), jnp.float32, -bound2, bound2)   # fc2.weight
    b2 = jax.random.uniform(k4, (1,), jnp.float32, -bound2, bound2)      # fc2.bias
    return w1, b1, w2, b2


def reference_forward(x, w1, b1, w2, b2):
    h = jnp.maximum(
        jnp.dot(x, w1.T, precision=jax.lax.Precision.HIGHEST) + b1, 0.0)
    return jax.nn.sigmoid(
        jnp.dot(h, w2.T, precision=jax.lax.Precision.HIGHEST) + b2)


if __name__ == "__main__":
    key = jax.random.PRNGKey(0)
    kx, kp = jax.random.split(key)
    w1, b1, w2, b2 = init_params(kp)

    # (batch, tile) cases: small single-tile path, and a multi-tile path with a
    # ragged tail (B=200, tile=128 -> padded to 256, grid=(2,)).
    for batch, tile in ((8, 1024), (200, 128)):
        x = jax.random.normal(kx, (batch, 16), dtype=jnp.float32)
        out = neural_net_forward(x, w1, b1, w2, b2, tile_b=tile)
        out = jax.block_until_ready(out)

        ref = reference_forward(x, w1, b1, w2, b2)
        assert out.shape == (batch, 1)
        assert jnp.allclose(out, ref, atol=2e-5, rtol=2e-5)

    print("KERNEL_OK")
</pallas_src>

<mosaic_0001>
module attributes {stable_mosaic.version = 11 : i64} {
  func.func @mlp_kernel(%arg0: i32, %arg1: memref<8x16xf32, #tpu.memory_space<vmem>>, %arg2: memref<64x16xf32, #tpu.memory_space<vmem>>, %arg3: memref<64x1xf32, #tpu.memory_space<vmem>>, %arg4: memref<1x64xf32, #tpu.memory_space<vmem>>, %arg5: memref<1xf32, #tpu.memory_space<smem>>, %arg6: memref<1x8xf32, #tpu.memory_space<vmem>>) attributes {dimension_semantics = [#tpu.dimension_semantics<parallel>], iteration_bounds = array<i64: 1>, scalar_prefetch = 0 : i64, scratch_operands = 0 : i64, tpu.core_type = #tpu.core_type<tc>, window_params = [{transform_indices = @transform_0, window_bounds = array<i64: 8, 16>}, {pipeline_mode = #tpu.pipeline_mode<synchronous>, transform_indices = @transform_1, window_bounds = array<i64: 64, 16>}, {pipeline_mode = #tpu.pipeline_mode<synchronous>, transform_indices = @transform_2, window_bounds = array<i64: 64, 1>}, {pipeline_mode = #tpu.pipeline_mode<synchronous>, transform_indices = @transform_3, window_bounds = array<i64: 1, 64>}, {transform_indices = @transform_4, window_bounds = array<i64: 1>}, {transform_indices = @transform_5, window_bounds = array<i64: 1, 8>}]} {
    %c0 = arith.constant 0 : index
    %c0_0 = arith.constant 0 : index
    %0 = vector.load %arg1[%c0, %c0_0] : memref<8x16xf32, #tpu.memory_space<vmem>>, vector<8x16xf32>
    %1 = tpu.transpose %0, [1, 0] : vector<8x16xf32> -> vector<16x8xf32>
    %c0_1 = arith.constant 0 : index
    %c0_2 = arith.constant 0 : index
    %2 = vector.load %arg2[%c0_1, %c0_2] : memref<64x16xf32, #tpu.memory_space<vmem>>, vector<64x16xf32>
    %cst = arith.constant dense<0.000000e+00> : vector<64x8xf32>
    %3 = tpu.matmul %2, %1, %cst {dimension_numbers = #tpu.dot_dimension_numbers<[1], [0], [0], [1], [0, 0, 1, 1], [], []>} : vector<64x16xf32>, vector<16x8xf32>, vector<64x8xf32> -> vector<64x8xf32>
    %c0_3 = arith.constant 0 : index
    %c0_4 = arith.constant 0 : index
    %4 = vector.load %arg3[%c0_3, %c0_4] : memref<64x1xf32, #tpu.memory_space<vmem>>, vector<64x1xf32>
    %5 = vector.broadcast %4 : vector<64x1xf32> to vector<64x8xf32>
    %6 = arith.addf %3, %5 : vector<64x8xf32>
    %cst_5 = arith.constant 0.000000e+00 : f32
    %7 = vector.broadcast %cst_5 : f32 to vector<64x8xf32>
    %8 = arith.maximumf %6, %7 : vector<64x8xf32>
    %c0_6 = arith.constant 0 : index
    %c0_7 = arith.constant 0 : index
    %9 = vector.load %arg4[%c0_6, %c0_7] : memref<1x64xf32, #tpu.memory_space<vmem>>, vector<1x64xf32>
    %cst_8 = arith.constant dense<0.000000e+00> : vector<1x8xf32>
    %10 = tpu.matmul %9, %8, %cst_8 {dimension_numbers = #tpu.dot_dimension_numbers<[1], [0], [0], [1], [0, 0, 1, 1], [], []>} : vector<1x64xf32>, vector<64x8xf32>, vector<1x8xf32> -> vector<1x8xf32>
    %c0_9 = arith.constant 0 : index
    %11 = memref.load %arg5[%c0_9] : memref<1xf32, #tpu.memory_space<smem>>
    %12 = vector.broadcast %11 : f32 to vector<1x8xf32>
    %13 = arith.addf %10, %12 : vector<1x8xf32>
    %14 = arith.negf %13 : vector<1x8xf32>
    %15 = math.exp %14 : vector<1x8xf32>
    %cst_10 = arith.constant 1.000000e+00 : f32
    %16 = vector.broadcast %cst_10 : f32 to vector<1x8xf32>
    %17 = arith.addf %16, %15 : vector<1x8xf32>
    %18 = arith.divf %16, %17 : vector<1x8xf32>
    %c0_11 = arith.constant 0 : index
    %c0_12 = arith.constant 0 : index
    %19 = vector.load %arg6[%c0_11, %c0_12] : memref<1x8xf32, #tpu.memory_space<vmem>>, vector<1x8xf32>
    tpu.vector_store %arg6[%c0_11, %c0_12], %18 {strides = array<i32>} : memref<1x8xf32, #tpu.memory_space<vmem>>, vector<1x8xf32>,
    return
  }
  func.func @transform_0(%arg0: i32) -> (i32, i32) {
    %c0_i32 = arith.constant 0 : i32
    %c0_i32_0 = arith.constant 0 : i32
    return %arg0, %c0_i32 : i32, i32
  }
  func.func @transform_1(%arg0: i32) -> (i32, i32) {
    %c0_i32 = arith.constant 0 : i32
    %c0_i32_0 = arith.constant 0 : i32
    %c0_i32_1 = arith.constant 0 : i32
    return %c0_i32, %c0_i32_0 : i32, i32
  }
  func.func @transform_2(%arg0: i32) -> (i32, i32) {
    %c0_i32 = arith.constant 0 : i32
    %c0_i32_0 = arith.constant 0 : i32
    %c0_i32_1 = arith.constant 0 : i32
    return %c0_i32, %c0_i32_0 : i32, i32
  }
  func.func @transform_3(%arg0: i32) -> (i32, i32) {
    %c0_i32 = arith.constant 0 : i32
    %c0_i32_0 = arith.constant 0 : i32
    %c0_i32_1 = arith.constant 0 : i32
    return %c0_i32, %c0_i32_0 : i32, i32
  }
  func.func @transform_4(%arg0: i32) -> i32 {
    %c0_i32 = arith.constant 0 : i32
    %c0_i32_0 = arith.constant 0 : i32
    return %c0_i32 : i32
  }
  func.func @transform_5(%arg0: i32) -> (i32, i32) {
    %c0_i32 = arith.constant 0 : i32
    %c0_i32_0 = arith.constant 0 : i32
    return %c0_i32, %arg0 : i32, i32
  }
}

</mosaic_0001>

<bundles_post_ra>
// kernel: neural_net_forward.1
= control target key start
LH: loop header
LB: loop body
LE: loop exit
PB: predicated region body
PF: predicated region fallthrough
CT: control target
= control target key end

     0   :  { %vm79_vm0 = vcmask 130048   ;;  %v428_v3 = vmov 0   ;;  %s542_s0 = inlined_call_operand.vmem [shape: f32[8,16], index: 0, kind: input, shape index: {}]   ;;  %s543_s1 = inlined_call_operand.vmem [shape: f32[64,16], index: 1, kind: input, shape index: {}]   ;;  %s544_s2 = inlined_call_operand.vmem [shape: f32[64,1], index: 2, kind: input, shape index: {}]   ;;  %s545_s3 = inlined_call_operand.vmem [shape: f32[1,64], index: 3, kind: input, shape index: {}]   ;;  %s546_s4 = inlined_call_operand.<no memory space> [shape: f32[1], index: 4, kind: input, shape index: {}]   ;;  %s547_s5 = inlined_call_operand.hbm [shape: f32[1,8], index: 5, kind: output, shape index: {}]  }
   0x1   :  { %v22_v0 = vld [vmem:[%s542_s0] sm:$0xff]  ;;  %v24_v2 = vld [vmem:[%s543_s1 + $0x8] sm:$0xff]  ;;  %398 = vset.pattern.permute.xlu0 %v428_v3  ;;  %v25_v4 = vld [vmem:[%s543_s1 + $0x10] sm:$0xff]  ;;  %399 = vset.pattern.permute.xlu1 %v428_v3 }
   0x2   :  { %v23_v1 = vld [vmem:[%s543_s1] sm:$0xff]  ;;  %348 = vmatprep.subr.msk.mxu0 %vm79_vm0, %v22_v0  ;;  %v33_v6 = vld [vmem:[%s544_s2 + $0x10] sm:$0xff]  ;;  %v32_v7 = vld [vmem:[%s544_s2 + $0x8] sm:$0xff] }
   0x3   :  { %350 = vmatprep.mubr.msk.f32.mxu0 %vm79_vm0, %v23_v1  ;;  %349 = vmatpush3.xpose.msk.msra.mxu0 %vm79_vm0, %v22_v0  ;;  %v31_v5 = vld [vmem:[%s544_s2] sm:$0xff]  ;;  %v34_v8 = vld [vmem:[%s544_s2 + $0x18] sm:$0xff] }
   0x4   :  { %41 = vperm.xlu0 %398, %v31_v5   ;;  %51 = vperm.xlu1 %399, %v33_v6  }
   0x6   :  { %351 = vmatmul.mubr.msk.f32.vlgmr.msra.gmra.mrb[0].mxu0 %vm79_vm0, %v24_v2 }
   0x7   :  { %11 = vsyncpa [#allocation4], 0  ;;  %353 = vmatprep.mubr.msk.f32.mxu0 %vm79_vm0, %v25_v4  ;;  %v26_v9 = vld [vmem:[%s543_s1 + $0x18] sm:$0xff]  ;;  %v27_v10 = vld [vmem:[%s543_s1 + $0x20] sm:$0xff]  ;;  %v429_v18 = vmov 0.0|0.0   ;;  %vm430_vm1 = vmmov 0   ;;  %v222_v57 = vstv %s546_s4 }
   0x8   :  { %46 = vperm.xlu0 %398, %v32_v7   ;;  %56 = vperm.xlu1 %399, %v34_v8   ;;  %v35_v11 = vld [vmem:[%s544_s2 + $0x20] sm:$0xff]  ;;  %v36_v12 = vld [vmem:[%s544_s2 + $0x28] sm:$0xff]  ;;  %v29_v14 = vld [vmem:[%s543_s1 + $0x30] sm:$0xff]  ;;  %v431_v19 = vmov 0.0   ;;  %vm223_vm2 = vcmask 523264   ;;  %s432_s27 = smov [#allocation3]  }
   0x9   :  { %v28_v13 = vld [vmem:[%s543_s1 + $0x28] sm:$0xff]  ;;  %v37_v15 = vld [vmem:[%s544_s2 + $0x30] sm:$0xff]  ;;  %v38_v16 = vld [vmem:[%s544_s2 + $0x38] sm:$0xff]  ;;  %381 = vmatprep.subr.bf16.mxu1 %v429_v18  ;;  %378 = vmatprep.mubr.msk.f32.mxu1 %vm430_vm1, %v431_v19  ;;  %s311_s28 = sshll.u32 %s432_s27, 4  ;;  %vm303_vm3 = vcmask 57344   ;;  %s312_s28 = int_to_ptr.vmem [resolvable:$true] %s311_s28 }
   0xa   :  { %354 = vmatmul.mubr.msk.f32.gmra.mrb[2].mxu0 %vm79_vm0, %v26_v9  ;;  %v30_v17 = vld [vmem:[%s543_s1 + $0x38] sm:$0xff]  ;;  %v220_v56 = vld [vmem:[%s545_s3] sm:$0x1]  ;;  %s404_s3 = scalar_lea.vmem %s312_s28, 16  ;;  %s408_s29 = scalar_lea.vmem %s312_s28, 32 }
   0xb   :  { %356 = vmatprep.mubr.msk.f32.mxu0 %vm79_vm0, %v27_v10  ;;  %p405_p0 = scmp.ne.s32.totalorder %s312_s28, %s404_s3  ;;  %p409_p1 = scmp.lt.s32.totalorder %s312_s28, %s312_s28 }
   0xc   :  { %61 = vperm.xlu0 %398, %v35_v11   ;;  %66 = vperm.xlu1 %399, %v36_v12   ;;  %p410_p2 = scmp.lt.s32.totalorder %s408_s29, %s404_s3 }
   0xe   :  { %357 = vmatmul.mubr.msk.f32.gmra.mrb[4].mxu0 %vm79_vm0, %v28_v13  ;;  %p411_p3 = por %p410_p2, %p409_p1 }
   0xf   :  { %359 = vmatprep.mubr.msk.f32.mxu0 %vm79_vm0, %v29_v14 }
  0x10   :  { %71 = vperm.xlu0 %398, %v37_v15   ;;  %76 = vperm.xlu1 %399, %v38_v16   ;;  %p412_p4 = pnand %p411_p3, %p405_p0 }
  0x12   :  { %360 = vmatmul.mubr.msk.f32.gmra.mrb[6].mxu0 %vm79_vm0, %v30_v17 }
  0x83   :  { %v42_v20 = vpop.permute.xlu0 %41  ;;  %v52_v21 = vpop.permute.xlu1 %51 }
  0x87   :  { %v47_v22 = vpop.permute.xlu0 %46  ;;  %v57_v23 = vpop.permute.xlu1 %56 }
  0x8b   :  { %v67_v33 = vpop.permute.xlu1 %66  ;;  %v62_v36 = vpop.permute.xlu0 %61 }
  0x8f   :  { %v77_v45 = vpop.permute.xlu1 %76  ;;  %v72_v48 = vpop.permute.xlu0 %71 }
  0xd9   :  { %v352_v24 = vpop.f32.mrb[0].mxu0 }
  0xda   :  { %v179_v25 = vadd.f32 %v352_v24, %v47_v22  ;;  %v173_v26 = vpop.f32.mrb[1].mxu0 }
  0xdb   :  { %v174_v27 = vadd.f32 %v173_v26, %v42_v20 }
  0xdc   :  { %v213_v28 = vmax.f32 %v179_v25, 0.0 }
  0xdd   :  { %v212_v29 = vmax.f32 %v174_v27, 0.0  ;;  %v355_v30 = vpop.f32.mrb[2].mxu0 }
  0xde   :  { %v189_v31 = vadd.f32 %v355_v30, %v57_v23  ;;  %v183_v32 = vpop.f32.mrb[3].mxu0 }
  0xdf   :  { %v184_v34 = vadd.f32 %v183_v32, %v52_v21  ;;  %v382_v35 = vpack.c.bf16 %v213_v28, %v212_v29 }
  0xe0   :  { %v215_v37 = vmax.f32 %v189_v31, 0.0 }
  0xe1   :  { %v214_v38 = vmax.f32 %v184_v34, 0.0  ;;  %v358_v39 = vpop.f32.mrb[4].mxu0  ;;  %383 = vmatpush3.bf16.msra.mxu1 %v382_v35 }
  0xe2   :  { %v199_v40 = vadd.f32 %v358_v39, %v67_v33  ;;  %v193_v41 = vpop.f32.mrb[5].mxu0  ;;  %384 = vmatprep.subr.bf16.mxu1 %v429_v18 }
  0xe3   :  { %v385_v42 = vpack.c.bf16 %v215_v37, %v214_v38  ;;  %v194_v43 = vadd.f32 %v193_v41, %v62_v36 }
  0xe4   :  { %v217_v44 = vmax.f32 %v199_v40, 0.0 }
  0xe5   :  { %v216_v46 = vmax.f32 %v194_v43, 0.0  ;;  %v361_v47 = vpop.f32.mrb[6].mxu0  ;;  %386 = vmatpush3.bf16.msra.mxu1 %v385_v42 }
  0xe6   :  { %v209_v49 = vadd.f32 %v361_v47, %v77_v45  ;;  %v203_v50 = vpop.f32.mrb[7].mxu0  ;;  %387 = vmatprep.subr.bf16.mxu1 %v429_v18 }
  0xe7   :  { %v388_v51 = vpack.c.bf16 %v217_v44, %v216_v46  ;;  %v204_v52 = vadd.f32 %v203_v50, %v72_v48 }
  0xe8   :  { %v219_v53 = vmax.f32 %v209_v49, 0.0 }
  0xe9   :  { %v218_v54 = vmax.f32 %v204_v52, 0.0  ;;  %389 = vmatpush3.bf16.msra.mxu1 %v388_v51 }
  0xea   :  { %390 = vmatprep.subr.bf16.mxu1 %v429_v18 }
  0xeb   :  { %v391_v55 = vpack.c.bf16 %v219_v53, %v218_v54 }
  0xed   :  { %392 = vmatpush3.bf16.msra.mxu1 %v391_v55 }
  0xf0   :  { %379 = vmatmul.mubr.msk.f32.vlgmr.msra.gmra.mrb[0].mxu1 %vm223_vm2, %v220_v56 }
 0x1c3   :  { %v293_v58 = vpop.f32.mrb[0].mxu1 }
 0x1c4   :  { %v294_v59 = vadd.f32 %v293_v58, %v222_v57  ;;  %v380_v60 = vpop.f32.mrb[1].mxu1 }
 0x1c6   :  { %v329_v61 = vmul.f32 -1.442695, %v294_v59 }
 0x1c8   :  { %400 = vpow2.f32 %v329_v61 }
 0x1d2   :  { %v401_v62 = vpop.eup %400 }
 0x1d3   :  { %v300_v63 = vadd.f32 1.0, %v401_v62 }
 0x1d5   :  { %402 = vrcp.f32 %v300_v63 }
 0x1df   :  { %v403_v0 = vpop.eup %402 }
 0x1e0   :  { %304 = vst.msk [vmem:[#allocation3] sm:$0x1] %vm303_vm3, %v403_v0 }
 0x1e1   :  { %415 = shalt.err (!%p412_p4)
}
 0x1e2   :  { %s416_s6 = scalar_lea.hbm %s547_s5, 16 }
 0x1e3   :  { %p417_p5 = scmp.ne.s32.totalorder %s547_s5, %s416_s6  ;;  %p420_p6 = scmp.lt.u32.totalorder %s416_s6, %s547_s5 }
 0x1e5   :  { %p422_p7 = pnand %p420_p6, %p417_p5 }
 0x1e7   :  { %425 = shalt.err (!%p422_p7)
}
 0x1e8   :  { %314 = dma.vmem_to_hbm [thread:$0]  %s312_s28, 16, %s547_s5, [#allocation4]  }
 0x1e9   :  { %426 = dma.done.wait [#allocation4], 16  }
 0x1ea   :  { %427 = vsyncadd [#allocation4], 4294967280 }
 0x1eb   :  { %318 = vsyncpa [#allocation4], 1 }

</bundles_post_ra>
